<compile_context>
chip_gen: v7x
topology: tpu7x:2x2x1
jax: 0.10.0
libtpu: 0.0.40
codegen_flags: <defaults>
</compile_context>

<pallas_src>
import functools
import math

import numpy as np
import jax
import jax.numpy as jnp
from jax.experimental import pallas as pl
from jax.experimental.pallas import tpu as pltpu


# --------------------------------------------------------------------------- #
# Seasonal-projection matrix  S = I - A,  trend = A @ x with
# A[i, j] = (# of window taps of row i that clamp to j) / win.
# For odd `win` this is exactly edge-replicate padding + AvgPool1d(win, stride=1)
# (Autoformer SeriesDecomp); for even `win` it is the clamped generalization.
# --------------------------------------------------------------------------- #
def _seasonal_projection_matrix(L, win):
    pad = (win - 1) // 2
    A = np.zeros((L, L), np.float32)
    for i in range(L):
        for k in range(win):
            j = min(max(i - pad + k, 0), L - 1)
            A[i, j] += 1.0
    A /= float(win)
    return jnp.asarray(np.eye(L, dtype=np.float32) - A)


# --------------------------------------------------------------------------- #
# Fused encoder kernel: one grid step = (batch element b, layer l).
# --------------------------------------------------------------------------- #
def _encoder_kernel(x_ref, seas_ref, w1_ref, w2_ref, gamma_ref, beta_ref,
                    out_ref, attn_ref):
    layer = pl.program_id(1)
    n_layers = pl.num_programs(1)

    # Output block index depends only on b, so out_ref stays resident in VMEM
    # across the layer axis and serves as the running-activation carry.
    @pl.when(layer == 0)
    def _():
        out_ref[0] = x_ref[0]

    x = out_ref[0]                                   # (L, D) f32
    S = seas_ref[...]                                # (L, L) seasonal projection
    scale = 1.0 / math.sqrt(x.shape[-1])

    # ---- self attention (q = k = v = x): matmuls on MXU, softmax on VPU/EUP --
    # Scale folded into q (L, D) instead of scores (L, L).
    # TODO(synk): flash-tile over a KV grid axis for large L (v7x has 64 MiB VMEM).
    s = jnp.dot(x * scale, x.T, preferred_element_type=jnp.float32)    # (L, L)
    s = s - jnp.max(s, axis=-1, keepdims=True)
    p = jnp.exp(s)
    p = p * pl.reciprocal(jnp.sum(p, axis=-1, keepdims=True), approx=True)
    attn_ref[0, 0] = p                               # per-layer attention weights
    attn_out = jnp.dot(p, x, preferred_element_type=jnp.float32)

    # ---- residual + decomp1: keep seasonal residual (trend is never stored) --
    y = jnp.dot(S, x + attn_out, preferred_element_type=jnp.float32)

    # ---- FFN: relu(y @ W1) @ W2 (kernel_size=1 convs), residual, decomp2 -----
    h = jnp.maximum(
        jnp.dot(y, w1_ref[0], preferred_element_type=jnp.float32), 0.0)
    z = y + jnp.dot(h, w2_ref[0], preferred_element_type=jnp.float32)
    out_ref[0] = jnp.dot(S, z, preferred_element_type=jnp.float32)

    # ---- final seasonal LayerNorm (Autoformer my_Layernorm), fused in-layer --
    @pl.when(layer == n_layers - 1)
    def _():
        v = out_ref[0]
        mu = jnp.mean(v, axis=-1, keepdims=True)
        var = jnp.mean((v - mu) ** 2, axis=-1, keepdims=True)
        xhat = (v - mu) * jax.lax.rsqrt(var + 1e-5)
        xhat = xhat * gamma_ref[...] + beta_ref[...]
        out_ref[0] = xhat - jnp.mean(xhat, axis=0, keepdims=True)


# --------------------------------------------------------------------------- #
# Wrapper: one pallas_call for the whole encoder.
# --------------------------------------------------------------------------- #
def encoder_forward(x, params, q_mva):
    B, L, D = x.shape
    w1 = params["w1"]                                # (n_layers, D, D_ff)
    w2 = params["w2"]                                # (n_layers, D_ff, D)
    n_layers, _, D_ff = w1.shape
    seas = _seasonal_projection_matrix(L, q_mva)     # (L, L) constant, fetched once
    gamma = params["norm_gamma"].reshape(1, D)
    beta = params["norm_beta"].reshape(1, D)

    out, attn = pl.pallas_call(
        _encoder_kernel,
        out_shape=(jax.ShapeDtypeStruct((B, L, D), jnp.float32),
                   jax.ShapeDtypeStruct((n_layers, B, L, L), jnp.float32)),
        grid=(B, n_layers),
        in_specs=[
            pl.BlockSpec((1, L, D), lambda b, l: (b, 0, 0)),       # x (layer-0 only)
            pl.BlockSpec((L, L), lambda b, l: (0, 0)),             # seasonal matrix
            pl.BlockSpec((1, D, D_ff), lambda b, l: (l, 0, 0)),    # conv1 weights
            pl.BlockSpec((1, D_ff, D), lambda b, l: (l, 0, 0)),    # conv2 weights
            pl.BlockSpec((1, D), lambda b, l: (0, 0)),             # norm gamma
            pl.BlockSpec((1, D), lambda b, l: (0, 0)),             # norm beta
        ],
        out_specs=(pl.BlockSpec((1, L, D), lambda b, l: (b, 0, 0)),
                   pl.BlockSpec((1, 1, L, L), lambda b, l: (l, b, 0, 0))),
        compiler_params=pltpu.CompilerParams(
            dimension_semantics=("parallel", "arbitrary")),
    )(x, seas, w1, w2, gamma, beta)

    attns = [attn[i] for i in range(n_layers)]       # per-layer (B, L, L)
    return out, attns


# --------------------------------------------------------------------------- #
# Parameter init (stacked per-layer weights so a single kernel can index them).
# --------------------------------------------------------------------------- #
def init_params(key, n_layers, D_model, D_ff):
    k1, k2 = jax.random.split(key)
    w1 = (jax.random.normal(k1, (n_layers, D_model, D_ff), jnp.float32)
          / math.sqrt(D_model))
    w2 = (jax.random.normal(k2, (n_layers, D_ff, D_model), jnp.float32)
          / math.sqrt(D_ff))
    return {
        "w1": w1,
        "w2": w2,
        "norm_gamma": jnp.ones((D_model,), jnp.float32),
        "norm_beta": jnp.zeros((D_model,), jnp.float32),
    }


if __name__ == "__main__":
    B, L, D_model = 2, 16, 32
    D_ff = 4 * D_model
    q_mva = 25
    n_layers = 2

    key = jax.random.PRNGKey(0)
    kx, kp = jax.random.split(key)
    x = jax.random.normal(kx, (B, L, D_model), jnp.float32)
    params = init_params(kp, n_layers, D_model, D_ff)

    fwd = jax.jit(functools.partial(encoder_forward, q_mva=q_mva))
    out, attns = fwd(x, params)
    out = jax.block_until_ready(out)
    attns = jax.block_until_ready(attns)

    assert out.shape == (B, L, D_model)
    assert len(attns) == n_layers
    assert all(a.shape == (B, L, L) for a in attns)
    assert jnp.all(jnp.isfinite(out))
    print("KERNEL_OK")
</pallas_src>

<mosaic_0001>
module attributes {stable_mosaic.version = 11 : i64} {
  func.func @_encoder_kernel(%arg0: i32, %arg1: i32, %arg2: memref<1x16x32xf32, #tpu.memory_space<vmem>>, %arg3: memref<16x16xf32, #tpu.memory_space<vmem>>, %arg4: memref<1x32x128xf32, #tpu.memory_space<vmem>>, %arg5: memref<1x128x32xf32, #tpu.memory_space<vmem>>, %arg6: memref<1x32xf32, #tpu.memory_space<vmem>>, %arg7: memref<1x32xf32, #tpu.memory_space<vmem>>, %arg8: memref<1x16x32xf32, #tpu.memory_space<vmem>>, %arg9: memref<1x1x16x16xf32, #tpu.memory_space<vmem>>) attributes {dimension_semantics = [#tpu.dimension_semantics<parallel>, #tpu.dimension_semantics<arbitrary>], iteration_bounds = array<i64: 2, 2>, scalar_prefetch = 0 : i64, scratch_operands = 0 : i64, tpu.core_type = #tpu.core_type<tc>, window_params = [{transform_indices = @transform_0, window_bounds = array<i64: 1, 16, 32>}, {pipeline_mode = #tpu.pipeline_mode<synchronous>, transform_indices = @transform_1, window_bounds = array<i64: 16, 16>}, {transform_indices = @transform_2, window_bounds = array<i64: 1, 32, 128>}, {transform_indices = @transform_3, window_bounds = array<i64: 1, 128, 32>}, {pipeline_mode = #tpu.pipeline_mode<synchronous>, transform_indices = @transform_4, window_bounds = array<i64: 1, 32>}, {pipeline_mode = #tpu.pipeline_mode<synchronous>, transform_indices = @transform_5, window_bounds = array<i64: 1, 32>}, {transform_indices = @transform_6, window_bounds = array<i64: 1, 16, 32>}, {transform_indices = @transform_7, window_bounds = array<i64: 1, 1, 16, 16>}]} {
    %c0_i32 = arith.constant 0 : i32
    %0 = arith.cmpi eq, %arg1, %c0_i32 : i32
    %1 = arith.extui %0 : i1 to i32
    %c0_i32_0 = arith.constant 0 : i32
    %2 = arith.cmpi ne, %1, %c0_i32_0 : i32
    scf.if %2 {
      %c0_28 = arith.constant 0 : index
      %c0_29 = arith.constant 0 : index
      %c0_30 = arith.constant 0 : index
      %42 = vector.load %arg2[%c0_28, %c0_29, %c0_30] : memref<1x16x32xf32, #tpu.memory_space<vmem>>, vector<1x16x32xf32>
      %43 = vector.shape_cast %42 : vector<1x16x32xf32> to vector<16x32xf32>
      %c0_31 = arith.constant 0 : index
      %c0_32 = arith.constant 0 : index
      %c0_33 = arith.constant 0 : index
      %44 = vector.load %arg8[%c0_31, %c0_32, %c0_33] : memref<1x16x32xf32, #tpu.memory_space<vmem>>, vector<1x16x32xf32>
      %45 = vector.shape_cast %44 : vector<1x16x32xf32> to vector<16x32xf32>
      %46 = vector.shape_cast %43 : vector<16x32xf32> to vector<1x16x32xf32>
      tpu.vector_store %arg8[%c0_31, %c0_32, %c0_33], %46 {strides = array<i32>} : memref<1x16x32xf32, #tpu.memory_space<vmem>>, vector<1x16x32xf32>,
    } else {
    }
    %c0 = arith.constant 0 : index
    %c0_1 = arith.constant 0 : index
    %c0_2 = arith.constant 0 : index
    %3 = vector.load %arg8[%c0, %c0_1, %c0_2] : memref<1x16x32xf32, #tpu.memory_space<vmem>>, vector<1x16x32xf32>
    %4 = vector.shape_cast %3 : vector<1x16x32xf32> to vector<16x32xf32>
    %c0_3 = arith.constant 0 : index
    %c0_4 = arith.constant 0 : index
    %5 = vector.load %arg3[%c0_3, %c0_4] : memref<16x16xf32, #tpu.memory_space<vmem>>, vector<16x16xf32>
    %cst = arith.constant 0.176776692 : f32
    %6 = vector.broadcast %cst : f32 to vector<16x32xf32>
    %7 = arith.mulf %4, %6 : vector<16x32xf32>
    %8 = tpu.transpose %4, [1, 0] : vector<16x32xf32> -> vector<32x16xf32>
    %cst_5 = arith.constant dense<0.000000e+00> : vector<16x16xf32>
    %9 = tpu.matmul %7, %8, %cst_5 {dimension_numbers = #tpu.dot_dimension_numbers<[1], [0], [0], [1], [0, 0, 1, 1], [], []>} : vector<16x32xf32>, vector<32x16xf32>, vector<16x16xf32> -> vector<16x16xf32>
    %cst_6 = arith.constant dense<0xFF800000> : vector<16xf32>
    %10 = vector.multi_reduction <maximumf>, %9, %cst_6 [1] : vector<16x16xf32> to vector<16xf32>
    %11 = vector.shape_cast %10 : vector<16xf32> to vector<16x1xf32>
    %12 = vector.broadcast %11 : vector<16x1xf32> to vector<16x16xf32>
    %13 = arith.subf %9, %12 : vector<16x16xf32>
    %14 = math.exp %13 : vector<16x16xf32>
    %cst_7 = arith.constant dense<0.000000e+00> : vector<16xf32>
    %15 = vector.multi_reduction <add>, %14, %cst_7 [1] : vector<16x16xf32> to vector<16xf32>
    %16 = vector.shape_cast %15 : vector<16xf32> to vector<16x1xf32>
    %17 = tpu.reciprocal %16 {approx = true} : vector<16x1xf32> -> vector<16x1xf32>
    %18 = vector.broadcast %17 : vector<16x1xf32> to vector<16x16xf32>
    %19 = arith.mulf %14, %18 : vector<16x16xf32>
    %c0_8 = arith.constant 0 : index
    %c0_9 = arith.constant 0 : index
    %c0_10 = arith.constant 0 : index
    %c0_11 = arith.constant 0 : index
    %20 = vector.load %arg9[%c0_8, %c0_9, %c0_10, %c0_11] : memref<1x1x16x16xf32, #tpu.memory_space<vmem>>, vector<1x1x16x16xf32>
    %21 = vector.shape_cast %20 : vector<1x1x16x16xf32> to vector<16x16xf32>
    %22 = vector.shape_cast %19 : vector<16x16xf32> to vector<1x1x16x16xf32>
    tpu.vector_store %arg9[%c0_8, %c0_9, %c0_10, %c0_11], %22 {strides = array<i32>} : memref<1x1x16x16xf32, #tpu.memory_space<vmem>>, vector<1x1x16x16xf32>,
    %cst_12 = arith.constant dense<0.000000e+00> : vector<16x32xf32>
    %23 = tpu.matmul %19, %4, %cst_12 {dimension_numbers = #tpu.dot_dimension_numbers<[1], [0], [0], [1], [0, 0, 1, 1], [], []>} : vector<16x16xf32>, vector<16x32xf32>, vector<16x32xf32> -> vector<16x32xf32>
    %24 = arith.addf %4, %23 : vector<16x32xf32>
    %cst_13 = arith.constant dense<0.000000e+00> : vector<16x32xf32>
    %25 = tpu.matmul %5, %24, %cst_13 {dimension_numbers = #tpu.dot_dimension_numbers<[1], [0], [0], [1], [0, 0, 1, 1], [], []>} : vector<16x16xf32>, vector<16x32xf32>, vector<16x32xf32> -> vector<16x32xf32>
    %c0_14 = arith.constant 0 : index
    %c0_15 = arith.constant 0 : index
    %c0_16 = arith.constant 0 : index
    %26 = vector.load %arg4[%c0_14, %c0_15, %c0_16] : memref<1x32x128xf32, #tpu.memory_space<vmem>>, vector<1x32x128xf32>
    %27 = vector.shape_cast %26 : vector<1x32x128xf32> to vector<32x128xf32>
    %cst_17 = arith.constant dense<0.000000e+00> : vector<16x128xf32>
    %28 = tpu.matmul %25, %27, %cst_17 {dimension_numbers = #tpu.dot_dimension_numbers<[1], [0], [0], [1], [0, 0, 1, 1], [], []>} : vector<16x32xf32>, vector<32x128xf32>, vector<16x128xf32> -> vector<16x128xf32>
    %cst_18 = arith.constant 0.000000e+00 : f32
    %29 = vector.broadcast %cst_18 : f32 to vector<16x128xf32>
    %30 = arith.maximumf %28, %29 : vector<16x128xf32>
    %c0_19 = arith.constant 0 : index
    %c0_20 = arith.constant 0 : index
    %c0_21 = arith.constant 0 : index
    %31 = vector.load %arg5[%c0_19, %c0_20, %c0_21] : memref<1x128x32xf32, #tpu.memory_space<vmem>>, vector<1x128x32xf32>
    %32 = vector.shape_cast %31 : vector<1x128x32xf32> to vector<128x32xf32>
    %cst_22 = arith.constant dense<0.000000e+00> : vector<16x32xf32>
    %33 = tpu.matmul %30, %32, %cst_22 {dimension_numbers = #tpu.dot_dimension_numbers<[1], [0], [0], [1], [0, 0, 1, 1], [], []>} : vector<16x128xf32>, vector<128x32xf32>, vector<16x32xf32> -> vector<16x32xf32>
    %34 = arith.addf %25, %33 : vector<16x32xf32>
    %cst_23 = arith.constant dense<0.000000e+00> : vector<16x32xf32>
    %35 = tpu.matmul %5, %34, %cst_23 {dimension_numbers = #tpu.dot_dimension_numbers<[1], [0], [0], [1], [0, 0, 1, 1], [], []>} : vector<16x16xf32>, vector<16x32xf32>, vector<16x32xf32> -> vector<16x32xf32>
    %c0_24 = arith.constant 0 : index
    %c0_25 = arith.constant 0 : index
    %c0_26 = arith.constant 0 : index
    %36 = vector.load %arg8[%c0_24, %c0_25, %c0_26] : memref<1x16x32xf32, #tpu.memory_space<vmem>>, vector<1x16x32xf32>
    %37 = vector.shape_cast %36 : vector<1x16x32xf32> to vector<16x32xf32>
    %38 = vector.shape_cast %35 : vector<16x32xf32> to vector<1x16x32xf32>
    tpu.vector_store %arg8[%c0_24, %c0_25, %c0_26], %38 {strides = array<i32>} : memref<1x16x32xf32, #tpu.memory_space<vmem>>, vector<1x16x32xf32>,
    %c1_i32 = arith.constant 1 : i32
    %39 = arith.cmpi eq, %arg1, %c1_i32 : i32
    %40 = arith.extui %39 : i1 to i32
    %c0_i32_27 = arith.constant 0 : i32
    %41 = arith.cmpi ne, %40, %c0_i32_27 : i32
    scf.if %41 {
      %c0_28 = arith.constant 0 : index
      %c0_29 = arith.constant 0 : index
      %c0_30 = arith.constant 0 : index
      %42 = vector.load %arg8[%c0_28, %c0_29, %c0_30] : memref<1x16x32xf32, #tpu.memory_space<vmem>>, vector<1x16x32xf32>
      %43 = vector.shape_cast %42 : vector<1x16x32xf32> to vector<16x32xf32>
      %cst_31 = arith.constant dense<0.000000e+00> : vector<16xf32>
      %44 = vector.multi_reduction <add>, %43, %cst_31 [1] : vector<16x32xf32> to vector<16xf32>
      %45 = vector.shape_cast %44 : vector<16xf32> to vector<16x1xf32>
      %cst_32 = arith.constant 3.200000e+01 : f32
      %46 = vector.broadcast %cst_32 : f32 to vector<16x1xf32>
      %47 = arith.divf %45, %46 : vector<16x1xf32>
      %48 = vector.broadcast %47 : vector<16x1xf32> to vector<16x32xf32>
      %49 = arith.subf %43, %48 : vector<16x32xf32>
      %50 = arith.mulf %49, %49 : vector<16x32xf32>
      %cst_33 = arith.constant dense<0.000000e+00> : vector<16xf32>
      %51 = vector.multi_reduction <add>, %50, %cst_33 [1] : vector<16x32xf32> to vector<16xf32>
      %52 = vector.shape_cast %51 : vector<16xf32> to vector<16x1xf32>
      %cst_34 = arith.constant 3.200000e+01 : f32
      %53 = vector.broadcast %cst_34 : f32 to vector<16x1xf32>
      %54 = arith.divf %52, %53 : vector<16x1xf32>
      %55 = vector.broadcast %47 : vector<16x1xf32> to vector<16x32xf32>
      %56 = arith.subf %43, %55 : vector<16x32xf32>
      %cst_35 = arith.constant 9.99999974E-6 : f32
      %57 = vector.broadcast %cst_35 : f32 to vector<16x1xf32>
      %58 = arith.addf %54, %57 : vector<16x1xf32>
      %59 = math.rsqrt %58 : vector<16x1xf32>
      %60 = vector.broadcast %59 : vector<16x1xf32> to vector<16x32xf32>
      %61 = arith.mulf %56, %60 : vector<16x32xf32>
      %c0_36 = arith.constant 0 : index
      %c0_37 = arith.constant 0 : index
      %62 = vector.load %arg6[%c0_36, %c0_37] : memref<1x32xf32, #tpu.memory_space<vmem>>, vector<1x32xf32>
      %63 = vector.broadcast %62 : vector<1x32xf32> to vector<16x32xf32>
      %64 = arith.mulf %61, %63 : vector<16x32xf32>
      %c0_38 = arith.constant 0 : index
      %c0_39 = arith.constant 0 : index
      %65 = vector.load %arg7[%c0_38, %c0_39] : memref<1x32xf32, #tpu.memory_space<vmem>>, vector<1x32xf32>
      %66 = vector.broadcast %65 : vector<1x32xf32> to vector<16x32xf32>
      %67 = arith.addf %64, %66 : vector<16x32xf32>
      %cst_40 = arith.constant dense<0.000000e+00> : vector<32xf32>
      %68 = vector.multi_reduction <add>, %67, %cst_40 [0] : vector<16x32xf32> to vector<32xf32>
      %69 = vector.shape_cast %68 : vector<32xf32> to vector<1x32xf32>
      %cst_41 = arith.constant 1.600000e+01 : f32
      %70 = vector.broadcast %cst_41 : f32 to vector<1x32xf32>
      %71 = arith.divf %69, %70 : vector<1x32xf32>
      %72 = vector.broadcast %71 : vector<1x32xf32> to vector<16x32xf32>
      %73 = arith.subf %67, %72 : vector<16x32xf32>
      %c0_42 = arith.constant 0 : index
      %c0_43 = arith.constant 0 : index
      %c0_44 = arith.constant 0 : index
      %74 = vector.load %arg8[%c0_42, %c0_43, %c0_44] : memref<1x16x32xf32, #tpu.memory_space<vmem>>, vector<1x16x32xf32>
      %75 = vector.shape_cast %74 : vector<1x16x32xf32> to vector<16x32xf32>
      %76 = vector.shape_cast %73 : vector<16x32xf32> to vector<1x16x32xf32>
      tpu.vector_store %arg8[%c0_42, %c0_43, %c0_44], %76 {strides = array<i32>} : memref<1x16x32xf32, #tpu.memory_space<vmem>>, vector<1x16x32xf32>,
    } else {
    }
    return
  }
  func.func @transform_0(%arg0: i32, %arg1: i32) -> (i32, i32, i32) {
    %c0_i32 = arith.constant 0 : i32
    %c0_i32_0 = arith.constant 0 : i32
    %c0_i32_1 = arith.constant 0 : i32
    return %arg0, %c0_i32, %c0_i32_0 : i32, i32, i32
  }
  func.func @transform_1(%arg0: i32, %arg1: i32) -> (i32, i32) {
    %c0_i32 = arith.constant 0 : i32
    %c0_i32_0 = arith.constant 0 : i32
    %c0_i32_1 = arith.constant 0 : i32
    return %c0_i32, %c0_i32_0 : i32, i32
  }
  func.func @transform_2(%arg0: i32, %arg1: i32) -> (i32, i32, i32) {
    %c0_i32 = arith.constant 0 : i32
    %c0_i32_0 = arith.constant 0 : i32
    %c0_i32_1 = arith.constant 0 : i32
    return %arg1, %c0_i32, %c0_i32_0 : i32, i32, i32
  }
  func.func @transform_3(%arg0: i32, %arg1: i32) -> (i32, i32, i32) {
    %c0_i32 = arith.constant 0 : i32
    %c0_i32_0 = arith.constant 0 : i32
    %c0_i32_1 = arith.constant 0 : i32
    return %arg1, %c0_i32, %c0_i32_0 : i32, i32, i32
  }
  func.func @transform_4(%arg0: i32, %arg1: i32) -> (i32, i32) {
    %c0_i32 = arith.constant 0 : i32
    %c0_i32_0 = arith.constant 0 : i32
    %c0_i32_1 = arith.constant 0 : i32
    return %c0_i32, %c0_i32_0 : i32, i32
  }
  func.func @transform_5(%arg0: i32, %arg1: i32) -> (i32, i32) {
    %c0_i32 = arith.constant 0 : i32
    %c0_i32_0 = arith.constant 0 : i32
    %c0_i32_1 = arith.constant 0 : i32
    return %c0_i32, %c0_i32_0 : i32, i32
  }
  func.func @transform_6(%arg0: i32, %arg1: i32) -> (i32, i32, i32) {
    %c0_i32 = arith.constant 0 : i32
    %c0_i32_0 = arith.constant 0 : i32
    %c0_i32_1 = arith.constant 0 : i32
    return %arg0, %c0_i32, %c0_i32_0 : i32, i32, i32
  }
  func.func @transform_7(%arg0: i32, %arg1: i32) -> (i32, i32, i32, i32) {
    %c0_i32 = arith.constant 0 : i32
    %c0_i32_0 = arith.constant 0 : i32
    %c0_i32_1 = arith.constant 0 : i32
    return %arg1, %arg0, %c0_i32, %c0_i32_0 : i32, i32, i32, i32
  }
}

</mosaic_0001>

<bundles_post_ra>
// kernel: encoder_forward.1
= control target key start
LH: loop header
LB: loop body
LE: loop exit
PB: predicated region body
PF: predicated region fallthrough
CT: control target
= control target key end

     0   :  { %s1804_s0 = inlined_call_operand.vmem [shape: f32[2,16,32], index: 0, kind: input, shape index: {}]   ;;  %s1805_s1 = inlined_call_operand.vmem [shape: f32[16,16], index: 1, kind: input, shape index: {}]   ;;  %s1806_s2 = inlined_call_operand.vmem [shape: f32[2,32,128], index: 2, kind: input, shape index: {}]   ;;  %s1807_s3 = inlined_call_operand.vmem [shape: f32[2,128,32], index: 3, kind: input, shape index: {}]   ;;  %s1808_s4 = inlined_call_operand.vmem [shape: f32[1,32], index: 4, kind: input, shape index: {}]   ;;  %s1809_s5 = inlined_call_operand.vmem [shape: f32[1,32], index: 5, kind: input, shape index: {}]   ;;  %s1810_s6 = inlined_call_operand.hbm [shape: f32[2,16,32], index: 6, kind: output, shape index: {0}]   ;;  %s1811_s7 = inlined_call_operand.vmem [shape: f32[2,2,16,16], index: 7, kind: output, shape index: {1}]  }
   0x1   :  { %1822 = sst [smem:[#allocation14_spill]] %s1810_s6 }
   0x2   :  { %13 = vsyncpa [#allocation3], 0 }
   0x3   :  { %15 = vsyncpa [#allocation3 + $0x1], 0  ;;  %s1567_s24 = smov 0   ;;  %s1569_s25 = smov 0  }
   0x4   :  { %s1571_s26 = smov 0   ;;  %s1573_s27 = smov 0  }
   0x5   :  { %s1575_s28 = smov 0   ;;  %s1577_s29 = smov 0  }
   0x6   :  { %s1579_s30 = smov 0   ;;  %s1581_s8 = smov 0  }
   0x7 LB: > { %1823 = sst [smem:[#allocation5_spill]] %s1494_s24  ;;  %s1131_s9 = sadd.s32 4294967295, %s1522_s8   ;;  %s1522_s8 = sphi %s1581_s8, %s21_s8   ;;  %s1518_s30 = sphi %s1579_s30, %s1844_s30   ;;  %s1514_s29 = sphi %s1577_s29, %s1843_s29   ;;  %s1510_s28 = sphi %s1575_s28, %s1842_s28   ;;  %s1506_s27 = sphi %s1573_s27, %s1841_s27   ;;  %s1502_s26 = sphi %s1571_s26, %s1840_s26   ;;  %s1498_s25 = sphi %s1569_s25, %s1846_s25   ;;  %s1494_s24 = sphi %s1567_s24, %s1845_s24  }
   0x8   : > { %1824 = sst [smem:[#allocation6_spill]] %s1502_s26  ;;  %s1132_s10 = sadd.s32 4294967294, %s1522_s8  }
   0x9   : > { %1825 = sst [smem:[#allocation7_spill]] %s1514_s29  ;;  %s30_s11 = sadd.s32 1, %s1514_s29 }
   0xa   : > { %1826 = sst [smem:[#allocation8_spill]] %s1518_s30  ;;  %p31_p0 = scmp.ge.s32.totalorder %s30_s11, 2 }
   0xb   : > { %1827 = sst [smem:[#allocation9_spill]] %s1522_s8  ;;  %s33_s12 = sadd.s32 1, %s1518_s30 }
   0xc   : > { %p191_p1 = scmp.ne.s32.totalorder %s1502_s26, %s1498_s25  ;;  %p192_p2 = scmp.eq.s32.totalorder %s1131_s9, 3 }
   0xd   : > { %s1848_s11 = smov (%p31_p0, %s30_s11), 0  ;;  %s1850_s12 = smov (!%p31_p0, %s33_s12), %s1518_s30 }
   0xe   : > { %1828 = sst [smem:[#allocation10_spill]] %s1848_s11  ;;  %p1616_p3 = por %p192_p2, %p191_p1 }
   0xf   : > { %p197_p4 = scmp.ne.s32.totalorder %s1498_s25, %s1494_s24  ;;  %p35_p5 = scmp.ge.s32.totalorder %s1850_s12, 2 }
  0x10   : > { %p198_p6 = scmp.eq.s32.totalorder %s1132_s10, 3  ;;  %p1135_p7 = scmp.ge.s32.totalorder %s1522_s8, 1 }
  0x11   : > { %p277_p8 = scmp.lt.s32.totalorder %s1522_s8, 5  ;;  %s1852_s12 = smov (%p35_p5, %s1850_s12), 0 }
  0x12   : > { %1830 = sst [smem:[#allocation11_spill]] %s1852_s12  ;;  %p1626_p9 = por %p198_p6, %p197_p4 }
  0x13   : > { %p278_p10 = pnand %p1135_p7, %p277_p8  ;;  %s178_s15 = ssub.s32 %s1518_s30, %s1852_s12 }
  0x14   : > { %s1831_s14 = scalar_select %p1626_p9, 1, 0 }
  0x15   : > { %s181_s16 = sadd.s32 1, %s1502_s26  ;;  %p179_p11 = scmp.eq.s32.totalorder %s178_s15, 0 }
  0x16   : > { %1832 = sst [smem:[#allocation12_spill]] %s1831_s14  ;;  %281 = sbr.rel (%p278_p10) target bundleno = 2042 (0x7fa), region = 44 }
  0x17   : > { %s1634_s17 = scalar_select %p179_p11, %s1502_s26, %s181_s16  }
  0x18   : > { %s1816_s18 = sand.u32 (!%p278_p10), 1, %s1498_s25   ;;  %p328_p12 = scmp.lt.s32.totalorder (!%p278_p10), %s1510_s28, 1 }
  0x19   : > { %1833 = sst [smem:[#allocation13_spill]] %s1634_s17  ;;  %s1136_s19 = sshll.u32 (!%p278_p10), %s1816_s18, 4 }
  0x1a   : > { %p333_p13 = scmp.lt.s32.totalorder (!%p278_p10), %s1506_s27, 1  ;;  %p1146_p0 = scmp.ne.s32.totalorder (!%p278_p10), %s1506_s27, 0 }
  0x1d   : > { %s329_s20 = scalar_select %p328_p12, %s1510_s28, 1 }
  0x1e   : > { %s334_s21 = scalar_select %p333_p13, %s1506_s27, 1 }
  0x1f   : > { %s1167_s22 = sshll.u32 %s329_s20, 4  ;;  %s1143_s23 = sshll.u32 %s329_s20, 1  ;;  %vm358_vm0 = vcmask (!%p1146_p0), 261120  }
  0x20   : > { %s332_s15 = scalar_lea.vmem %s1804_s0, %s1167_s22  ;;  %s1168_s16 = sshll.u32 %s334_s21, 5 }
  0x21   : > { %s1649_s30 = scalar_lea.vmem %s1806_s2, %s1168_s16  ;;  %s1169_s29 = sshll.u32 %s334_s21, 7  ;;  %v356_v0 = vld [vmem:[%s332_s15] sm:$0xff] (!%p1146_p0)  ;;  %v357_v1 = vld [vmem:[%s332_s15 + $0x8] sm:$0xff] (!%p1146_p0) }
  0x22   : > { %s1654_s18 = scalar_lea.vmem %s1807_s3, %s1169_s29  ;;  %s1144_s14 = sshll.u32 %s334_s21, 2 }
  0x23   : > { %s349_s24 = sadd.s32 %s1144_s14, %s1143_s23  ;;  %s1661_s22 = scalar_lea.vmem [#allocation2], %s1136_s19 }
  0x24   : > { %s1145_s8 = sshll.u32 %s349_s24, 3  ;;  %355 = sbr.rel (%p1146_p0) target bundleno = 43 (0x2b), region = 48  ;;  %359 = vst.msk [vmem:[%s1661_s22] sm:$0xff] (!%p1146_p0), %vm358_vm0, %v356_v0  ;;  %360 = vst.msk [vmem:[%s1661_s22 + $0x8] sm:$0xff] (!%p1146_p0), %vm358_vm0, %v357_v1 }
  0x25   : > { %s1659_s9 = scalar_lea.vmem %s1811_s7, %s1145_s8 }
  0x2b PF: > { %v361_v2 = vld [vmem:[%s1661_s22] sm:$0xff]  ;;  %v362_v3 = vld [vmem:[%s1661_s22 + $0x8] sm:$0xff]  ;;  %vm367_vm1 = vcmask 261120   ;;  %vm455_vm3 = vcmask 130048   ;;  %p1159_p1 = scmp.ne.s32.totalorder %s1506_s27, 1 }
  0x2c   : > { %v1285_v4 = vpack.c.bf16 %v362_v3, %v361_v2  ;;  %vm1286_vm2 = vmpackc.low %vm367_vm1, %vm367_vm1  ;;  %v365_v5 = vmul.f32 0.17677669, %v361_v2  ;;  %v366_v6 = vmul.f32 0.17677669, %v362_v3  ;;  %v363_v27 = vld [vmem:[%s1805_s1] sm:$0xff]  ;;  %v645_v32 = vld [vmem:[%s1649_s30 + $0x8] sm:$0xff] }
  0x2d   : > { %v644_v31 = vld [vmem:[%s1649_s30] sm:$0xff]  ;;  %v646_v36 = vld [vmem:[%s1649_s30 + $0x10] sm:$0xff]  ;;  %v647_v37 = vld [vmem:[%s1649_s30 + $0x18] sm:$0xff] }
  0x2e   : > { %1287 = vmatprep.subr.msk.bf16.mxu0 %vm1286_vm2, %v1285_v4  ;;  %1215 = vmatprep.mubr.msk.f32.mxu0 %vm367_vm1, %v365_v5  ;;  %v1299_v35 = vpack.c.bf16 %v645_v32, %v644_v31  ;;  %v1693_v38 = vld [vmem:[%s1805_s1 + $0x8] sm:$0xff]  ;;  %v1303_v39 = vpack.c.bf16 %v647_v37, %v646_v36  ;;  %v731_v40 = vld [vmem:[%s1654_s18] sm:$0xff]  ;;  %v733_v42 = vld [vmem:[%s1654_s18 + $0x10] sm:$0xff] }
  0x2f   : > { %1290 = vmatpush3.bf16.xpose.msk.msra.mxu0 %vm1286_vm2, %v1285_v4  ;;  %v732_v41 = vld [vmem:[%s1654_s18 + $0x8] sm:$0xff]  ;;  %v734_v44 = vld [vmem:[%s1654_s18 + $0x18] sm:$0xff]  ;;  %v735_v46 = vld [vmem:[%s1654_s18 + $0x20] sm:$0xff] }
  0x30   : > { %1292 = vmatprep.subr.bf16.mxu0 %v1285_v4  ;;  %v1307_v43 = vpack.c.bf16 %v732_v41, %v731_v40  ;;  %v1311_v45 = vpack.c.bf16 %v734_v44, %v733_v42  ;;  %v736_v47 = vld [vmem:[%s1654_s18 + $0x28] sm:$0xff]  ;;  %v737_v49 = vld [vmem:[%s1654_s18 + $0x30] sm:$0xff]  ;;  %v738_v50 = vld [vmem:[%s1654_s18 + $0x38] sm:$0xff] }
  0x31   : > { %v1315_v48 = vpack.c.bf16 %v736_v47, %v735_v46  ;;  %v1319_v51 = vpack.c.bf16 %v738_v50, %v737_v49  ;;  %v739_v52 = vld [vmem:[%s1654_s18 + $0x40] sm:$0xff]  ;;  %v740_v53 = vld [vmem:[%s1654_s18 + $0x48] sm:$0xff]  ;;  %v741_v55 = vld [vmem:[%s1654_s18 + $0x50] sm:$0xff] }
  0x32   : > { %1308 = vmatprep.subr.bf16.mxu1 %v1307_v43  ;;  %v1323_v54 = vpack.c.bf16 %v740_v53, %v739_v52  ;;  %v742_v56 = vld [vmem:[%s1654_s18 + $0x58] sm:$0xff]  ;;  %v743_v58 = vld [vmem:[%s1654_s18 + $0x60] sm:$0xff]  ;;  %v744_v59 = vld [vmem:[%s1654_s18 + $0x68] sm:$0xff] }
  0x33   : > { %1310 = vmatpush3.bf16.msra.mxu1 %v1307_v43  ;;  %v1327_v57 = vpack.c.bf16 %v742_v56, %v741_v55  ;;  %v1331_v60 = vpack.c.bf16 %v744_v59, %v743_v58  ;;  %v745_v63 = vld [vmem:[%s1654_s18 + $0x70] sm:$0xff]  ;;  %v746_v0 = vld [vmem:[%s1654_s18 + $0x78] sm:$0xff] }
  0x34   : > { %1312 = vmatprep.subr.bf16.mxu1 %v1311_v45  ;;  %v1335_v1 = vpack.c.bf16 %v746_v0, %v745_v63 }
  0x36   : > { %1216 = vmatmul.mubr.msk.f32.vlgmr.msra.gmra.mrb[0].mxu0 %vm367_vm1, %v366_v6 }
  0x37   : > { %1294 = vmatpush3.bf16.msra.mxu0 %v1285_v4  ;;  %1314 = vmatpush3.bf16.msra.mxu1 %v1311_v45 }
  0x38   : > { %1316 = vmatprep.subr.bf16.mxu1 %v1315_v48 }
  0x3b   : > { %1318 = vmatpush3.bf16.msra.mxu1 %v1315_v48 }
  0x3c   : > { %1320 = vmatprep.subr.bf16.mxu1 %v1319_v51 }
  0x3f   : > { %1322 = vmatpush3.bf16.msra.mxu1 %v1319_v51 }
  0x40   : > { %1324 = vmatprep.subr.bf16.mxu1 %v1323_v54 }
  0x43   : > { %1326 = vmatpush3.bf16.msra.mxu1 %v1323_v54 }
  0x44   : > { %1328 = vmatprep.subr.bf16.mxu1 %v1327_v57 }
  0x47   : > { %1330 = vmatpush3.bf16.msra.mxu1 %v1327_v57 }
  0x48   : > { %1332 = vmatprep.subr.bf16.mxu1 %v1331_v60 }
  0x4b   : > { %1334 = vmatpush3.bf16.msra.mxu1 %v1331_v60 }
  0x4c   : > { %1336 = vmatprep.subr.bf16.mxu1 %v1335_v1 }
  0x4f   : > { %1338 = vmatpush3.bf16.msra.mxu1 %v1335_v1 }
 0x109   : > { %v1217_v7 = vpop.f32.mrb[0].mxu0 }
 0x10a   : > { %v446_v8 = vpop.f32.mrb[1].mxu0  ;;  %v459_v10 = vsel %vm455_vm3, %v1217_v7, -inf }
 0x10b   : > { %v456_v9 = vsel %vm455_vm3, %v446_v8, -inf }
 0x10c   : > { %457 = vmax.xlane.f32.xlu0 %v456_v9 }
 0x110   : > { %460 = vmax.xlane.f32.xlu0 %v459_v10 }
 0x199   : > { %v458_v11 = vpop.xlane.xlu0 %457 }
 0x19a   : > { %v462_v12 = vsub.f32 %v446_v8, %v458_v11 }
 0x19c   : > { %v464_v13 = vmul.f32 1.442695, %v462_v12 }
 0x19d   : > { %v461_v14 = vpop.xlane.xlu0 %460 }
 0x19e   : > { %1416 = vpow2.f32 %v464_v13  ;;  %v463_v15 = vsub.f32 %v1217_v7, %v461_v14 }
 0x1a0   : > { %v466_v16 = vmul.f32 1.442695, %v463_v15 }
 0x1a2   : > { %1418 = vpow2.f32 %v466_v16 }
 0x1a8   : > { %v1417_v17 = vpop.eup %1416 }
 0x1a9   : > { %v468_v18 = vsel %vm455_vm3, %v1417_v17, 0.0 }
 0x1aa   : > { %469 = vadd.xlane.f32.xlu1 %v468_v18 }
 0x1ac   : > { %v1419_v19 = vpop.eup %1418 }
 0x1ad   : > { %v471_v20 = vsel %vm455_vm3, %v1419_v19, 0.0 }
 0x1ae   : > { %472 = vadd.xlane.f32.xlu1 %v471_v20 }
 0x237   : > { %v470_v21 = vpop.xlane.xlu1 %469 }
 0x238   : > { %1420 = vrcp.f32 %v470_v21 }
 0x23b   : > { %v473_v22 = vpop.xlane.xlu1 %472 }
 0x23c   : > { %1422 = vrcp.f32 %v473_v22 }
 0x242   : > { %v1421_v23 = vpop.eup %1420 }
 0x243   : > { %v476_v24 = vmul.f32 %v1421_v23, %v1417_v17 }
 0x245   : > { %478 = vst.msk [vmem:[%s1659_s9] sm:$0xff] %vm455_vm3, %v476_v24  ;;  %1222 = vmatprep.mubr.msk.f32.mxu0 %vm455_vm3, %v476_v24 }
 0x246   : > { %v1423_v25 = vpop.eup %1422 }
 0x247   : > { %v477_v26 = vmul.f32 %v1423_v25, %v1419_v19 }
 0x249   : > { %479 = vst.msk [vmem:[%s1659_s9 + $0x8] sm:$0xff] %vm455_vm3, %v477_v26  ;;  %1223 = vmatmul.mubr.msk.f32.vlgmr.msra.gmra.mrb[2].mxu0 %vm455_vm3, %v477_v26 }
 0x24a   : > { %1229 = vmatprep.mubr.msk.f32.mxu0 %vm455_vm3, %v363_v27 }
 0x31c   : > { %v1224_v28 = vpop.f32.mrb[2].mxu0 }
 0x31d   : > { %v562_v29 = vadd.f32 %v1224_v28, %v362_v3  ;;  %v552_v30 = vpop.f32.mrb[3].mxu0 }
 0x31e   : > { %v561_v33 = vadd.f32 %v552_v30, %v361_v2 }
 0x320   : > { %v1295_v34 = vpack.c.bf16 %v562_v29, %v561_v33 }
 0x322   : > { %1296 = vmatprep.subr.bf16.mxu0 %v1295_v34 }
 0x323   : > { %1298 = vmatpush3.bf16.msra.mxu0 %v1295_v34  ;;  %v1160_v34 = vld [vmem:[%s1808_s4] ss:$0 sm:$0xff] (!%p1159_p1) }
 0x324   : > { %1300 = vmatprep.subr.bf16.mxu0 %v1299_v35 }
 0x326   : > { %1230 = vmatmul.mubr.msk.f32.vlgmr.msra.gmra.mrb[4].mxu0 %vm455_vm3, %v1693_v38 }
 0x327   : > { %1302 = vmatpush3.bf16.msra.mxu0 %v1299_v35 }
 0x328   : > { %1304 = vmatprep.subr.bf16.mxu0 %v1303_v39 }
 0x32b   : > { %1306 = vmatpush3.bf16.msra.mxu0 %v1303_v39 }
 0x3f9   : > { %v1231_v61 = vpop.f32.mrb[4].mxu0 }
 0x3fa   : > { %v635_v62 = vpop.f32.mrb[5].mxu0 }
 0x3fb   : > { %1240 = vmatprep.mubr.msk.f32.mxu0 %vm367_vm1, %v635_v62 }
 0x3fc   : > { %1241 = vmatmul.mubr.msk.f32.vlgmr.msra.gmra.mrb[6].mxu0 %vm367_vm1, %v1231_v61 }
 0x3fd   : > { %1282 = vmatprep.mubr.msk.f32.mxu0 %vm455_vm3, %v363_v27 }
 0x4cf   : > { %v1242_v2 = vpop.f32.mrb[6].mxu0 }
 0x4d0   : > { %v720_v3 = vpop.f32.mrb[7].mxu0  ;;  %v730_v5 = vmax.f32 %v1242_v2, 0.0 }
 0x4d1   : > { %v729_v4 = vmax.f32 %v720_v3, 0.0 }
 0x4d3   : > { %1275 = vmatprep.mubr.f32.mxu1 %v729_v4 }
 0x4d4   : > { %1276 = vmatmul.mubr.f32.vlgmr.msra.gmra.mrb[0].mxu1 %v730_v5 }
 0x5a7   : > { %v1277_v6 = vpop.f32.mrb[0].mxu1 }
 0x5a8   : > { %v823_v7 = vadd.f32 %v1277_v6, %v1231_v61  ;;  %v813_v8 = vpop.f32.mrb[1].mxu1 }
 0x5a9   : > { %v822_v9 = vadd.f32 %v813_v8, %v635_v62 }
 0x5ab   : > { %v1339_v10 = vpack.c.bf16 %v823_v7, %v822_v9 }
 0x5ad   : > { %1340 = vmatprep.subr.bf16.mxu0 %v1339_v10 }
 0x5ae   : > { %1342 = vmatpush3.bf16.msra.mxu0 %v1339_v10 }
 0x5b1   : > { %1283 = vmatmul.mubr.msk.f32.vlgmr.msra.gmra.mrb[8].mxu0 %vm455_vm3, %v1693_v38  ;;  %v1161_v38 = vld [vmem:[%s1809_s5] ss:$0 sm:$0xff] (!%p1159_p1) }
 0x680   : > { %904 = sbr.rel (%p1159_p1) target bundleno = 2015 (0x7df), region = 52 }
 0x684   : > { %v1284_v11 = vpop.f32.mrb[8].mxu0 }
 0x685   : > { %900 = vst.msk [vmem:[%s1661_s22 + $0x8] sm:$0xff] %vm367_vm1, %v1284_v11  ;;  %v890_v12 = vpop.f32.mrb[9].mxu0 }
 0x686   : > { %899 = vst.msk [vmem:[%s1661_s22] sm:$0xff] %vm367_vm1, %v890_v12 }
 0x68c   : > { %v906_v14 = vld [vmem:[%s1661_s22 + $0x8] sm:$0xff] }
 0x68d   : > { %v905_v13 = vld [vmem:[%s1661_s22] sm:$0xff]  ;;  %v910_v16 = vsel %vm367_vm1, %v906_v14, 0.0 }
 0x68e   : > { %v907_v15 = vsel %vm367_vm1, %v905_v13, 0.0 }
 0x68f   : > { %908 = vadd.xlane.f32.xlu0 %v907_v15 }
 0x693   : > { %911 = vadd.xlane.f32.xlu0 %v910_v16 }
 0x71c   : > { %v909_v17 = vpop.xlane.xlu0 %908 }
 0x71d   : > { %v914_v18 = vmul.f32 0.03125, %v909_v17 }
 0x71f   : > { %v916_v19 = vsub.f32 %v905_v13, %v914_v18 }
 0x720   : > { %v912_v20 = vpop.xlane.xlu0 %911 }
 0x721   : > { %v915_v21 = vmul.f32 0.03125, %v912_v20  ;;  %v918_v22 = vmul.f32 %v916_v19, %v916_v19 }
 0x723   : > { %v917_v23 = vsub.f32 %v906_v14, %v915_v21  ;;  %v920_v24 = vsel %vm367_vm1, %v918_v22, 0.0 }
 0x724   : > { %921 = vadd.xlane.f32.xlu1 %v920_v24 }
 0x725   : > { %v919_v25 = vmul.f32 %v917_v23, %v917_v23 }
 0x727   : > { %v923_v26 = vsel %vm367_vm1, %v919_v25, 0.0 }
 0x728   : > { %924 = vadd.xlane.f32.xlu1 %v923_v26 }
 0x7b1   : > { %v922_v27 = vpop.xlane.xlu1 %921 }
 0x7b2   : > { %v926_v28 = vmul.f32 0.03125, %v922_v27 }
 0x7b4   : > { %v928_v29 = vadd.f32 1e-05, %v926_v28 }
 0x7b5   : > { %v925_v30 = vpop.xlane.xlu1 %924 }
 0x7b6   : > { %1424 = vrsqrt.f32 %v928_v29  ;;  %v927_v31 = vmul.f32 0.03125, %v925_v30 }
 0x7b8   : > { %v929_v32 = vadd.f32 1e-05, %v927_v31 }
 0x7ba   : > { %1426 = vrsqrt.f32 %v929_v32 }
 0x7c0   : > { %v1425_v33 = vpop.eup %1424 }
 0x7c1   : > { %v932_v35 = vmul.f32 %v1425_v33, %v916_v19 }
 0x7c3   : > { %v941_v36 = vmul.f32 %v1160_v34, %v932_v35 }
 0x7c4   : > { %v1427_v37 = vpop.eup %1426 }
 0x7c5   : > { %v933_v39 = vmul.f32 %v1427_v37, %v917_v23  ;;  %v950_v40 = vadd.f32 %v1161_v38, %v941_v36 }
 0x7c7   : > { %v942_v41 = vmul.f32 %v1160_v34, %v933_v39  ;;  %v952_v43 = vsel %vm367_vm1, %v950_v40, 0.0 }
 0x7c9   : > { %v951_v42 = vadd.f32 %v1161_v38, %v942_v41 }
 0x7cb   : > { %v953_v44 = vsel %vm367_vm1, %v951_v42, 0.0 }
 0x7cc   : > { %v954_v45 = vadd.f32 %v953_v44, %v952_v43 }
 0x7ce   : > { %v955_v46 = vrot.slane %v954_v45, 4 }
 0x7d0   : > { %v956_v47 = vadd.f32 %v955_v46, %v954_v45 }
 0x7d2   : > { %v957_v48 = vrot.slane %v956_v47, 2 }
 0x7d4   : > { %v958_v49 = vadd.f32 %v957_v48, %v956_v47 }
 0x7d6   : > { %v959_v50 = vrot.slane %v958_v49, 1 }
 0x7d8   : > { %v960_v51 = vadd.f32 %v959_v50, %v958_v49 }
 0x7da   : > { %v962_v52 = vmul.f32 0.0625, %v960_v51 }
 0x7dc   : > { %v963_v53 = vsub.f32 %v950_v40, %v962_v52  ;;  %v964_v54 = vsub.f32 %v951_v42, %v962_v52 }
 0x7de   : > { %965 = vst.msk [vmem:[%s1661_s22] sm:$0xff] %vm367_vm1, %v963_v53  ;;  %966 = vst.msk [vmem:[%s1661_s22 + $0x8] sm:$0xff] %vm367_vm1, %v964_v54 }
 0x7df PF: > { %s1170_s12 = sshll.u32 %s1510_s28, 8  ;;  %s1834_s18 = sld [smem:[#allocation14_spill]] }
 0x7e0   : > { %s990_s21 = sshll.u32 %s1661_s22, 4  ;;  %s1835_s23 = sand.u32 1, %s1498_s25   ;;  %s1748_s21 = int_to_ptr.vmem [resolvable:$true] %s990_s21 }
 0x7e1   : > { %s1752_s10 = scalar_lea.sflag [#allocation3], %s1835_s23  ;;  %s1428_s15 = scalar_lea.vmem %s1748_s21, 256 }
 0x7e2   : > { %p1429_p2 = scmp.ne.s32.totalorder %s1748_s21, %s1428_s15  ;;  %s1524_s28 = smov [#allocation2]  }
 0x7e3   : > { %s1432_s16 = sshll.u32 %s1524_s28, 4  ;;  %s1433_s16 = int_to_ptr.vmem [resolvable:$false] %s1432_s16 }
 0x7e4   : > { %p1430_p4 = pnand %p1429_p2, %p1616_p3  ;;  %s1434_s20 = scalar_lea.vmem %s1433_s16, 512 }
 0x7e5   : > { %s1745_s19 = scalar_lea.hbm %s1834_s18, %s1170_s12  ;;  %p1435_p6 = scmp.lt.s32.totalorder %s1748_s21, %s1433_s16 }
 0x7e6   : > { %p1431_p5 = pneg %p1430_p4  ;;  %p1436_p7 = scmp.lt.s32.totalorder %s1434_s20, %s1428_s15 }
 0x7e8   : > { %p1437_p8 = por %p1436_p7, %p1435_p6 }
 0x7ea   : > { %p1438_p10 = pnand %p1437_p8, %p1431_p5 }
 0x7ec   : > { %1441 = shalt.err (!%p1438_p10)
}
 0x7ed   : > { %s1442_s9 = scalar_lea.hbm %s1745_s19, 256  ;;  %s1446_s24 = scalar_lea.hbm %s1834_s18, 512 }
 0x7ee   : > { %p1443_p11 = scmp.ne.s32.totalorder %s1745_s19, %s1442_s9  ;;  %p1447_p0 = scmp.lt.u32.totalorder %s1745_s19, %s1834_s18 }
 0x7ef   : > { %p1448_p1 = scmp.lt.u32.totalorder %s1446_s24, %s1442_s9  ;;  %p1450_p4 = scmp.lt.u32.totalorder %s1442_s9, %s1745_s19 }
 0x7f0   : > { %p1444_p12 = pnand %p1443_p11, %p1616_p3 }
 0x7f1   : > { %p1449_p2 = por %p1448_p1, %p1447_p0 }
 0x7f2   : > { %p1445_p13 = pneg %p1444_p12 }
 0x7f3   : > { %p1451_p5 = por %p1450_p4, %p1449_p2 }
 0x7f5   : > { %p1452_p6 = pnand %p1451_p5, %p1445_p13 }
 0x7f7   : > { %1455 = shalt.err (!%p1452_p6)
}
 0x7f8   : > { %s1525_s27 = smov 128   ;;  %s1526_s30 = smov 8  }
 0x7f9   : > { %1343 = dma.vmem_to_hbm [thread:$0]  (%p1616_p3), %s1748_s21, 256, %s1745_s19, %s1752_s10, %s1525_s27, %s1525_s27, %s1526_s30  }
 0x7fa PF: > { %s1836_s8 = sld [smem:[#allocation9_spill]]  ;;  %s1837_s11 = sld [smem:[#allocation5_spill]] }
 0x800   : > { %p1349_p7 = scmp.ge.s32.totalorder %s1836_s8, 2  ;;  %s1008_s14 = sand.u32 1, %s1837_s11  }
 0x801   : > { %s1009_s17 = scalar_lea.sflag [#allocation3], %s1008_s14 }
 0x802   : > { %p1346_p8 = pnand %p1349_p7, %p1626_p9 }
 0x804   : > { %1489 = dma.done.wait (!%p1346_p8), %s1009_s17, 256  }
 0x805   : > { %1491 = vsyncadd (!%p1346_p8), %s1009_s17, 4294967040  ;;  %s21_s8 = sadd.s32 1, %s1836_s8   ;;  %s1839_s23 = sld [smem:[#allocation6_spill]] }
 0x806   : > { %p18_p10 = scmp.ge.s32.totalorder %s21_s8, 6   ;;  %s1840_s26 = sld [smem:[#allocation13_spill]] }
 0x807   : > { %s1841_s27 = sld [smem:[#allocation7_spill]]  ;;  %s1842_s28 = sld [smem:[#allocation8_spill]] }
 0x808   : > { %s1843_s29 = sld [smem:[#allocation10_spill]]  ;;  %s1844_s30 = sld [smem:[#allocation11_spill]] }
 0x809   : > { %s1845_s24 = smov %s1498_s25  ;;  %20 = sbr.rel (!%p18_p10) target bundleno = 7 (0x7), region = 105 }
 0x80b   : > { %s1846_s25 = smov %s1839_s23 }
 0x810   :  { %1026 = vsyncpa [#allocation3], 1 }
 0x811   :  { %1028 = vsyncpa [#allocation3 + $0x1], 1 }

</bundles_post_ra>
